<compile_context>
chip_gen: v7x
topology: tpu7x:2x2x1
jax: 0.10.0
libtpu: 0.0.40
codegen_flags: <defaults>
</compile_context>

<pallas_src>
import functools

import jax
import jax.numpy as jnp
from jax.experimental import pallas as pl
from jax.experimental.pallas import tpu as pltpu

D_STATE = 288   # state feature size (300 - 12)
D_ACT = 12      # number of discrete actions
D_IN = 300      # linear1 input features
D_H = 256       # linear1 output features
D_OUT = 288     # linear2 output features


# ----------------------------- kernels ---------------------------------------


def fnet_kernel_gather(state_ref, act_bias_ref, w1s_ref, w2_ref, b2_ref, out_ref):
    """Batch tile: MXU dot1 + gathered (W1a+b1) add -> ReLU -> MXU dot2 + b2."""
    # state arrives as f32; cast to bf16 in-kernel (no wrapper-side HBM convert pass).
    y1 = jnp.dot(state_ref[...].astype(jnp.bfloat16), w1s_ref[...],
                 preferred_element_type=jnp.float32)             # (tb, 256) f32
    y1 = y1 + act_bias_ref[...].astype(jnp.float32)              # gathered w1a[action] + b1
    y1 = jnp.maximum(y1, 0.0)                                    # ReLU (f32 epilogue)
    y2 = jnp.dot(y1.astype(jnp.bfloat16), w2_ref[...],
                 preferred_element_type=jnp.float32)             # (tb, 288) f32
    out_ref[...] = y2 + b2_ref[...]


def fnet_kernel_select(state_ref, action_ref, w1s_ref, act_tbl_ref, w2_ref, b2_ref,
                       out_ref):
    """v5e-friendly variant: in-kernel select chain over the b1-folded action table."""
    y1 = jnp.dot(state_ref[...].astype(jnp.bfloat16), w1s_ref[...],
                 preferred_element_type=jnp.float32)             # (tb, 256) f32

    # Hoist the action broadcast ONCE (JAX does not CSE broadcast_in_dim).
    act_b = jnp.broadcast_to(action_ref[...], y1.shape)          # (tb, 256) int32
    # Select chain (b1 is folded into the table rows): ~half the VALU ops of the old
    # compare+cast+mul+add accumulate loop, and only one add into y1 afterwards.
    sel = jnp.broadcast_to(act_tbl_ref[pl.ds(0, 1), :], y1.shape)
    for j in range(1, D_ACT):
        sel = jnp.where(act_b == j, act_tbl_ref[pl.ds(j, 1), :], sel)

    y1 = jnp.maximum(y1 + sel, 0.0)                              # ReLU (f32)
    y2 = jnp.dot(y1.astype(jnp.bfloat16), w2_ref[...],
                 preferred_element_type=jnp.float32)
    out_ref[...] = y2 + b2_ref[...]


# ----------------------------- params ----------------------------------------


def init_params(key):
    """Deterministic init mimicking PyTorch nn.Linear defaults (uniform ±1/sqrt(fan_in))."""
    k1, k2, k3, k4 = jax.random.split(key, 4)
    bound1 = 1.0 / jnp.sqrt(jnp.float32(D_IN))
    bound2 = 1.0 / jnp.sqrt(jnp.float32(D_H))
    w1 = jax.random.uniform(k1, (D_H, D_IN), jnp.float32, -bound1, bound1)   # (256, 300)
    b1 = jax.random.uniform(k2, (D_H,), jnp.float32, -bound1, bound1)        # (256,)
    w2 = jax.random.uniform(k3, (D_OUT, D_H), jnp.float32, -bound2, bound2)  # (288, 256)
    b2 = jax.random.uniform(k4, (D_OUT,), jnp.float32, -bound2, bound2)      # (288,)
    return w1, b1, w2, b2


def prepare_params(params):
    """One-time weight prep: transpose/split/cast so per-call work is zero."""
    w1, b1, w2, b2 = params
    w1_t = w1.T                                                   # (300, 256)
    w1s = w1_t[:D_STATE, :].astype(jnp.bfloat16)                  # (288, 256) bf16, MXU lhs->rhs
    act_table = (w1_t[D_STATE:, :] + b1[None, :]).astype(jnp.float32)  # (12, 256), b1 folded in
    return {
        "w1s": w1s,
        "act_table": act_table,                                   # f32, for in-kernel select path
        "act_table_bf16": act_table.astype(jnp.bfloat16),         # bf16, for wrapper-gather path
        "w2_t": w2.T.astype(jnp.bfloat16),                        # (256, 288) bf16
        "b2": b2.reshape(1, D_OUT).astype(jnp.float32),           # (1, 288) f32
    }


# ----------------------------- wrapper ----------------------------------------


@functools.lru_cache(maxsize=1)
def _default_gather_action():
    """Wrapper-gather for the action path on v6e/v7x, in-kernel select on v5e."""
    try:
        kind = jax.devices()[0].device_kind.lower()
    except Exception:
        return True
    return "v5" not in kind


def _pick_tb(B, tb):
    """Batch-tile size: big (default 512), multiple of 8, >=2 grid steps when B > 8."""
    if B <= 8:
        return B                                  # single block; equals the full batch dim
    tb = max(8, (tb // 8) * 8)
    half_cap = ((-(-B // 2)) + 7) // 8 * 8        # round_up(cdiv(B, 2), 8) -> >= 2 grid steps
    return min(tb, half_cap)


def fnet_forward(state, action, prepared, *, tb=512, gather_action=None):
    if gather_action is None:
        gather_action = _default_gather_action()

    B = state.shape[0]
    tb = _pick_tb(B, tb)
    n_tiles = pl.cdiv(B, tb)

    action_flat = action.reshape(B).astype(jnp.int32)

    row = lambda i: (i, 0)        # batch-tiled arrays
    resident = lambda i: (0, 0)   # weights/biases: same block every step -> stay in VMEM
    cparams = pltpu.CompilerParams(
        dimension_semantics=("parallel",))        # shards B across TCs on v7x

    if gather_action:
        # Gather (W1a + b1)[action] in the wrapper as a bf16 (B, 256) batch-tiled input;
        # the kernel's action path becomes a single add (+512 B/row of HBM).
        act_bias = prepared["act_table_bf16"][action_flat]        # (B, 256) bf16
        return pl.pallas_call(
            fnet_kernel_gather,
            out_shape=jax.ShapeDtypeStruct((B, D_OUT), jnp.float32),
            grid=(n_tiles,),
            in_specs=[
                pl.BlockSpec((tb, D_STATE), row),        # state tile (f32, cast in-kernel)
                pl.BlockSpec((tb, D_H), row),            # gathered action bias (bf16)
                pl.BlockSpec((D_STATE, D_H), resident),  # W1 state part (bf16)
                pl.BlockSpec((D_H, D_OUT), resident),    # W2^T (bf16)
                pl.BlockSpec((1, D_OUT), resident),      # b2
            ],
            out_specs=pl.BlockSpec((tb, D_OUT), row),
            compiler_params=cparams,
        )(state, act_bias, prepared["w1s"], prepared["w2_t"], prepared["b2"])

    # v5e path: action ids go in, select chain runs in-kernel.
    action_2d = action_flat.reshape(B, 1)
    return pl.pallas_call(
        fnet_kernel_select,
        out_shape=jax.ShapeDtypeStruct((B, D_OUT), jnp.float32),
        grid=(n_tiles,),
        in_specs=[
            pl.BlockSpec((tb, D_STATE), row),            # state tile (f32, cast in-kernel)
            pl.BlockSpec((tb, 1), row),                  # action ids
            pl.BlockSpec((D_STATE, D_H), resident),      # W1 state part (bf16)
            pl.BlockSpec((D_ACT, D_H), resident),        # (W1 action rows + b1), f32
            pl.BlockSpec((D_H, D_OUT), resident),        # W2^T (bf16)
            pl.BlockSpec((1, D_OUT), resident),          # b2
        ],
        out_specs=pl.BlockSpec((tb, D_OUT), row),
        compiler_params=cparams,
    )(state, action_2d, prepared["w1s"], prepared["act_table"],
      prepared["w2_t"], prepared["b2"])


# ----------------------------- reference & test --------------------------------


def fnet_reference(state, action, params):
    """Pure-JAX f32 reference matching the PyTorch forward exactly."""
    w1, b1, w2, b2 = params
    onehot = jax.nn.one_hot(action.reshape(-1), D_ACT, dtype=jnp.float32)
    x = jnp.concatenate([state, onehot], axis=1)          # (B, 300)
    y = jax.nn.relu(x @ w1.T + b1)
    return y @ w2.T + b2


if __name__ == "__main__":
    key = jax.random.PRNGKey(0)
    k_param, k_state, k_act = jax.random.split(key, 3)

    params = init_params(k_param)
    prepared = prepare_params(params)      # one-time weight prep (cached alongside params)

    def check(B, fold, tb=512):
        state = jax.random.normal(jax.random.fold_in(k_state, fold), (B, D_STATE), jnp.float32)
        action = jax.random.randint(jax.random.fold_in(k_act, fold), (B, 1), 0, D_ACT, jnp.int32)
        ref = fnet_reference(state, action, params)
        for gather in (True, False):       # exercise both the gather and select kernels
            out = jax.block_until_ready(
                fnet_forward(state, action, prepared, tb=tb, gather_action=gather))
            assert out.shape == (B, D_OUT), out.shape
            # bf16 matmul inputs -> loosened tolerance vs the f32 reference.
            assert jnp.allclose(out, ref, atol=5e-2, rtol=5e-2), \
                f"mismatch vs reference (B={B}, gather={gather})"

    check(8, 0)        # single-tile case (grid of 1)
    check(64, 1)       # multi-tile case: default tb policy -> tb=32, 2 parallel grid steps
    check(20, 2)       # B not a multiple of tb -> partial last tile (padding/clamp path)

    print("KERNEL_OK")
</pallas_src>

<mosaic_0001>
module attributes {stable_mosaic.version = 11 : i64} {
  func.func @fnet_kernel_gather(%arg0: i32, %arg1: memref<8x288xf32, #tpu.memory_space<vmem>>, %arg2: memref<8x256xbf16, #tpu.memory_space<vmem>>, %arg3: memref<288x256xbf16, #tpu.memory_space<vmem>>, %arg4: memref<256x288xbf16, #tpu.memory_space<vmem>>, %arg5: memref<1x288xf32, #tpu.memory_space<vmem>>, %arg6: memref<8x288xf32, #tpu.memory_space<vmem>>) attributes {dimension_semantics = [#tpu.dimension_semantics<parallel>], iteration_bounds = array<i64: 1>, scalar_prefetch = 0 : i64, scratch_operands = 0 : i64, tpu.core_type = #tpu.core_type<tc>, window_params = [{transform_indices = @transform_0, window_bounds = array<i64: 8, 288>}, {transform_indices = @transform_1, window_bounds = array<i64: 8, 256>}, {pipeline_mode = #tpu.pipeline_mode<synchronous>, transform_indices = @transform_2, window_bounds = array<i64: 288, 256>}, {pipeline_mode = #tpu.pipeline_mode<synchronous>, transform_indices = @transform_3, window_bounds = array<i64: 256, 288>}, {pipeline_mode = #tpu.pipeline_mode<synchronous>, transform_indices = @transform_4, window_bounds = array<i64: 1, 288>}, {transform_indices = @transform_5, window_bounds = array<i64: 8, 288>}]} {
    %c0 = arith.constant 0 : index
    %c0_0 = arith.constant 0 : index
    %0 = vector.load %arg1[%c0, %c0_0] : memref<8x288xf32, #tpu.memory_space<vmem>>, vector<8x288xf32>
    %1 = arith.truncf %0 : vector<8x288xf32> to vector<8x288xbf16>
    %c0_1 = arith.constant 0 : index
    %c0_2 = arith.constant 0 : index
    %2 = vector.load %arg3[%c0_1, %c0_2] : memref<288x256xbf16, #tpu.memory_space<vmem>>, vector<288x256xbf16>
    %cst = arith.constant dense<0.000000e+00> : vector<8x256xf32>
    %3 = tpu.matmul %1, %2, %cst {dimension_numbers = #tpu.dot_dimension_numbers<[1], [0], [0], [1], [0, 0, 1, 1], [], []>} : vector<8x288xbf16>, vector<288x256xbf16>, vector<8x256xf32> -> vector<8x256xf32>
    %c0_3 = arith.constant 0 : index
    %c0_4 = arith.constant 0 : index
    %4 = vector.load %arg2[%c0_3, %c0_4] : memref<8x256xbf16, #tpu.memory_space<vmem>>, vector<8x256xbf16>
    %5 = arith.extf %4 : vector<8x256xbf16> to vector<8x256xf32>
    %6 = arith.addf %3, %5 : vector<8x256xf32>
    %cst_5 = arith.constant 0.000000e+00 : f32
    %7 = vector.broadcast %cst_5 : f32 to vector<8x256xf32>
    %8 = arith.maximumf %6, %7 : vector<8x256xf32>
    %9 = arith.truncf %8 : vector<8x256xf32> to vector<8x256xbf16>
    %c0_6 = arith.constant 0 : index
    %c0_7 = arith.constant 0 : index
    %10 = vector.load %arg4[%c0_6, %c0_7] : memref<256x288xbf16, #tpu.memory_space<vmem>>, vector<256x288xbf16>
    %cst_8 = arith.constant dense<0.000000e+00> : vector<8x288xf32>
    %11 = tpu.matmul %9, %10, %cst_8 {dimension_numbers = #tpu.dot_dimension_numbers<[1], [0], [0], [1], [0, 0, 1, 1], [], []>} : vector<8x256xbf16>, vector<256x288xbf16>, vector<8x288xf32> -> vector<8x288xf32>
    %c0_9 = arith.constant 0 : index
    %c0_10 = arith.constant 0 : index
    %12 = vector.load %arg5[%c0_9, %c0_10] : memref<1x288xf32, #tpu.memory_space<vmem>>, vector<1x288xf32>
    %13 = vector.broadcast %12 : vector<1x288xf32> to vector<8x288xf32>
    %14 = arith.addf %11, %13 : vector<8x288xf32>
    %c0_11 = arith.constant 0 : index
    %c0_12 = arith.constant 0 : index
    %15 = vector.load %arg6[%c0_11, %c0_12] : memref<8x288xf32, #tpu.memory_space<vmem>>, vector<8x288xf32>
    tpu.vector_store %arg6[%c0_11, %c0_12], %14 {strides = array<i32>} : memref<8x288xf32, #tpu.memory_space<vmem>>, vector<8x288xf32>,
    return
  }
  func.func @transform_0(%arg0: i32) -> (i32, i32) {
    %c0_i32 = arith.constant 0 : i32
    %c0_i32_0 = arith.constant 0 : i32
    return %arg0, %c0_i32 : i32, i32
  }
  func.func @transform_1(%arg0: i32) -> (i32, i32) {
    %c0_i32 = arith.constant 0 : i32
    %c0_i32_0 = arith.constant 0 : i32
    return %arg0, %c0_i32 : i32, i32
  }
  func.func @transform_2(%arg0: i32) -> (i32, i32) {
    %c0_i32 = arith.constant 0 : i32
    %c0_i32_0 = arith.constant 0 : i32
    %c0_i32_1 = arith.constant 0 : i32
    return %c0_i32, %c0_i32_0 : i32, i32
  }
  func.func @transform_3(%arg0: i32) -> (i32, i32) {
    %c0_i32 = arith.constant 0 : i32
    %c0_i32_0 = arith.constant 0 : i32
    %c0_i32_1 = arith.constant 0 : i32
    return %c0_i32, %c0_i32_0 : i32, i32
  }
  func.func @transform_4(%arg0: i32) -> (i32, i32) {
    %c0_i32 = arith.constant 0 : i32
    %c0_i32_0 = arith.constant 0 : i32
    %c0_i32_1 = arith.constant 0 : i32
    return %c0_i32, %c0_i32_0 : i32, i32
  }
  func.func @transform_5(%arg0: i32) -> (i32, i32) {
    %c0_i32 = arith.constant 0 : i32
    %c0_i32_0 = arith.constant 0 : i32
    return %arg0, %c0_i32 : i32, i32
  }
}

</mosaic_0001>

<bundles_post_ra>
// kernel: tpu_custom_call.1
= control target key start
LH: loop header
LB: loop body
LE: loop exit
PB: predicated region body
PF: predicated region fallthrough
CT: control target
= control target key end

     0   :  { %s1342_s0 = inlined_call_operand.vmem [shape: f32[8,288], index: 0, kind: input, shape index: {}]   ;;  %s1343_s1 = inlined_call_operand.vmem [shape: bf16[8,256], index: 1, kind: input, shape index: {}]   ;;  %s1344_s2 = inlined_call_operand.vmem [shape: bf16[288,256], index: 2, kind: input, shape index: {}]   ;;  %s1345_s3 = inlined_call_operand.vmem [shape: bf16[256,288], index: 3, kind: input, shape index: {}]   ;;  %s1346_s4 = inlined_call_operand.vmem [shape: f32[1,288], index: 4, kind: input, shape index: {}]   ;;  %s1347_s5 = inlined_call_operand.hbm [shape: f32[8,288], index: 5, kind: output, shape index: {}]  }
   0x1   :  { %v887_v0 = vld [vmem:[%s1344_s2 + $0x4] ss:$8 sps:$4 sm:$0xff]   ;;  %v889_v1 = vld [vmem:[%s1344_s2] ss:$8 sps:$4 sm:$0xff]   ;;  %v890_v2 = vld [vmem:[%s1344_s2 + $0x14] ss:$8 sps:$4 sm:$0xff]  }
   0x2   :  { %251 = vmatprep.subr.bf16.mxu0 %v887_v0  ;;  %v892_v3 = vld [vmem:[%s1344_s2 + $0x10] ss:$8 sps:$4 sm:$0xff]   ;;  %v893_v4 = vld [vmem:[%s1344_s2 + $0x24] ss:$8 sps:$4 sm:$0xff]   ;;  %v895_v5 = vld [vmem:[%s1344_s2 + $0x20] ss:$8 sps:$4 sm:$0xff]  }
   0x3   :  { %252 = vmatpush1.bf16.msra.mxu0 %v889_v1  ;;  %v896_v6 = vld [vmem:[%s1344_s2 + $0x34] ss:$8 sps:$4 sm:$0xff]   ;;  %v898_v7 = vld [vmem:[%s1344_s2 + $0x30] ss:$8 sps:$4 sm:$0xff]   ;;  %v899_v8 = vld [vmem:[%s1344_s2 + $0x44] ss:$8 sps:$4 sm:$0xff]  }
   0x4   :  { %253 = vmatprep.subr.bf16.mxu0 %v890_v2  ;;  %v901_v9 = vld [vmem:[%s1344_s2 + $0x40] ss:$8 sps:$4 sm:$0xff]   ;;  %v902_v10 = vld [vmem:[%s1344_s2 + $0x54] ss:$8 sps:$4 sm:$0xff]   ;;  %v904_v11 = vld [vmem:[%s1344_s2 + $0x50] ss:$8 sps:$4 sm:$0xff]  }
   0x5   :  { %v905_v12 = vld [vmem:[%s1344_s2 + $0x64] ss:$8 sps:$4 sm:$0xff]   ;;  %v907_v15 = vld [vmem:[%s1344_s2 + $0x60] ss:$8 sps:$4 sm:$0xff]   ;;  %v908_v16 = vld [vmem:[%s1344_s2 + $0x74] ss:$8 sps:$4 sm:$0xff]  }
   0x6   :  { %v23_v13 = vld [vmem:[%s1342_s0 + $0x8] sm:$0xff]  ;;  %v941_v17 = vld [vmem:[%s1345_s3 + $0x4] ss:$12 sps:$4 sm:$0xff]   ;;  %v947_v23 = vld [vmem:[%s1345_s3 + $0x34] ss:$12 sps:$4 sm:$0xff]  }
   0x7   :  { %254 = vmatpush1.bf16.msra.mxu0 %v892_v3  ;;  %v26_v14 = vpack.c.bf16 %v23_v13, %v23_v13  ;;  %v943_v18 = vld [vmem:[%s1345_s3] ss:$12 sps:$4 sm:$0xff]   ;;  %v910_v19 = vld [vmem:[%s1344_s2 + $0x70] ss:$8 sps:$4 sm:$0xff]   ;;  %674 = vmatprep.subr.bf16.mxu1 %v941_v17  ;;  %v944_v20 = vld [vmem:[%s1345_s3 + $0x1c] ss:$12 sps:$4 sm:$0xff]  }
   0x8   :  { %255 = vmatprep.subr.bf16.mxu0 %v893_v4  ;;  %v911_v21 = vld [vmem:[%s1344_s2 + $0x84] ss:$8 sps:$4 sm:$0xff]   ;;  %675 = vmatpush1.bf16.msra.mxu1 %v943_v18  ;;  %v913_v24 = vld [vmem:[%s1344_s2 + $0x80] ss:$8 sps:$4 sm:$0xff]   ;;  %v914_v25 = vld [vmem:[%s1344_s2 + $0x94] ss:$8 sps:$4 sm:$0xff]  }
   0x9   :  { %283 = vmatprep.mubr.bf16.mxu0 %v26_v14  ;;  %v946_v22 = vld [vmem:[%s1345_s3 + $0x18] ss:$12 sps:$4 sm:$0xff]   ;;  %676 = vmatprep.subr.bf16.mxu1 %v944_v20  ;;  %v949_v26 = vld [vmem:[%s1345_s3 + $0x30] ss:$12 sps:$4 sm:$0xff]   ;;  %v952_v30 = vld [vmem:[%s1345_s3 + $0x48] ss:$12 sps:$4 sm:$0xff]  }
   0xa   :  { %v950_v27 = vld [vmem:[%s1345_s3 + $0x4c] ss:$12 sps:$4 sm:$0xff]   ;;  %v953_v31 = vld [vmem:[%s1345_s3 + $0x64] ss:$12 sps:$4 sm:$0xff]   ;;  %v919_v32 = vld [vmem:[%s1344_s2 + $0xa0] ss:$8 sps:$4 sm:$0xff]  }
   0xb   :  { %256 = vmatpush1.bf16.msra.mxu0 %v895_v5  ;;  %v916_v28 = vld [vmem:[%s1344_s2 + $0x90] ss:$8 sps:$4 sm:$0xff]   ;;  %v917_v29 = vld [vmem:[%s1344_s2 + $0xa4] ss:$8 sps:$4 sm:$0xff]   ;;  %v920_v33 = vld [vmem:[%s1344_s2 + $0xb4] ss:$8 sps:$4 sm:$0xff]  }
   0xc   :  { %257 = vmatprep.subr.bf16.mxu0 %v896_v6  ;;  %677 = vmatpush1.bf16.msra.mxu1 %v946_v22  ;;  %v955_v34 = vld [vmem:[%s1345_s3 + $0x60] ss:$12 sps:$4 sm:$0xff]   ;;  %v956_v35 = vld [vmem:[%s1345_s3 + $0x7c] ss:$12 sps:$4 sm:$0xff]   ;;  %v922_v36 = vld [vmem:[%s1344_s2 + $0xb0] ss:$8 sps:$4 sm:$0xff]  }
   0xd   :  { %678 = vmatprep.subr.bf16.mxu1 %v947_v23  ;;  %v923_v37 = vld [vmem:[%s1344_s2 + $0xc4] ss:$8 sps:$4 sm:$0xff]   ;;  %v959_v39 = vld [vmem:[%s1345_s3 + $0x94] ss:$12 sps:$4 sm:$0xff]   ;;  %v961_v42 = vld [vmem:[%s1345_s3 + $0x90] ss:$12 sps:$4 sm:$0xff]  }
   0xe   :  { %v958_v38 = vld [vmem:[%s1345_s3 + $0x78] ss:$12 sps:$4 sm:$0xff]   ;;  %v925_v40 = vld [vmem:[%s1344_s2 + $0xc0] ss:$8 sps:$4 sm:$0xff]   ;;  %v926_v41 = vld [vmem:[%s1344_s2 + $0xd4] ss:$8 sps:$4 sm:$0xff]  }
   0xf   :  { %258 = vmatpush1.bf16.msra.mxu0 %v898_v7  ;;  %v962_v43 = vld [vmem:[%s1345_s3 + $0xac] ss:$12 sps:$4 sm:$0xff]   ;;  %v964_v46 = vld [vmem:[%s1345_s3 + $0xa8] ss:$12 sps:$4 sm:$0xff]   ;;  %v965_v47 = vld [vmem:[%s1345_s3 + $0xc4] ss:$12 sps:$4 sm:$0xff]  }
  0x10   :  { %259 = vmatprep.subr.bf16.mxu0 %v899_v8  ;;  %679 = vmatpush1.bf16.msra.mxu1 %v949_v26  ;;  %v928_v44 = vld [vmem:[%s1344_s2 + $0xd0] ss:$8 sps:$4 sm:$0xff]   ;;  %v929_v45 = vld [vmem:[%s1344_s2 + $0xe4] ss:$8 sps:$4 sm:$0xff]   ;;  %v931_v48 = vld [vmem:[%s1344_s2 + $0xe0] ss:$8 sps:$4 sm:$0xff]  }
  0x11   :  { %680 = vmatprep.subr.bf16.mxu1 %v950_v27  ;;  %v932_v49 = vld [vmem:[%s1344_s2 + $0xf4] ss:$8 sps:$4 sm:$0xff]   ;;  %v967_v50 = vld [vmem:[%s1345_s3 + $0xc0] ss:$12 sps:$4 sm:$0xff]  }
  0x13   :  { %260 = vmatpush1.bf16.msra.mxu0 %v901_v9 }
  0x14   :  { %261 = vmatprep.subr.bf16.mxu0 %v902_v10  ;;  %681 = vmatpush1.bf16.msra.mxu1 %v952_v30 }
  0x15   :  { %682 = vmatprep.subr.bf16.mxu1 %v953_v31 }
  0x17   :  { %262 = vmatpush1.bf16.msra.mxu0 %v904_v11 }
  0x18   :  { %263 = vmatprep.subr.bf16.mxu0 %v905_v12  ;;  %683 = vmatpush1.bf16.msra.mxu1 %v955_v34 }
  0x19   :  { %684 = vmatprep.subr.bf16.mxu1 %v956_v35 }
  0x1b   :  { %264 = vmatpush1.bf16.msra.mxu0 %v907_v15 }
  0x1c   :  { %265 = vmatprep.subr.bf16.mxu0 %v908_v16  ;;  %685 = vmatpush1.bf16.msra.mxu1 %v958_v38 }
  0x1d   :  { %686 = vmatprep.subr.bf16.mxu1 %v959_v39 }
  0x1f   :  { %266 = vmatpush1.bf16.msra.mxu0 %v910_v19 }
  0x20   :  { %267 = vmatprep.subr.bf16.mxu0 %v911_v21  ;;  %687 = vmatpush1.bf16.msra.mxu1 %v961_v42 }
  0x21   :  { %688 = vmatprep.subr.bf16.mxu1 %v962_v43 }
  0x23   :  { %268 = vmatpush1.bf16.msra.mxu0 %v913_v24 }
  0x24   :  { %269 = vmatprep.subr.bf16.mxu0 %v914_v25  ;;  %689 = vmatpush1.bf16.msra.mxu1 %v964_v46 }
  0x27   :  { %270 = vmatpush1.bf16.msra.mxu0 %v916_v28 }
  0x28   :  { %271 = vmatprep.subr.bf16.mxu0 %v917_v29 }
  0x2b   :  { %272 = vmatpush1.bf16.msra.mxu0 %v919_v32 }
  0x2c   :  { %273 = vmatprep.subr.bf16.mxu0 %v920_v33 }
  0x2f   :  { %274 = vmatpush1.bf16.msra.mxu0 %v922_v36 }
  0x30   :  { %275 = vmatprep.subr.bf16.mxu0 %v923_v37 }
  0x33   :  { %276 = vmatpush1.bf16.msra.mxu0 %v925_v40 }
  0x34   :  { %277 = vmatprep.subr.bf16.mxu0 %v926_v41 }
  0x37   :  { %278 = vmatpush1.bf16.msra.mxu0 %v928_v44 }
  0x38   :  { %279 = vmatprep.subr.bf16.mxu0 %v929_v45 }
  0x39   :  { %10 = vsyncpa [#allocation3], 0  ;;  %690 = vmatprep.subr.bf16.mxu1 %v965_v47  ;;  %v968_v51 = vld [vmem:[%s1345_s3 + $0xdc] ss:$12 sps:$4 sm:$0xff]   ;;  %v934_v52 = vld [vmem:[%s1344_s2 + $0xf0] ss:$8 sps:$4 sm:$0xff]   ;;  %v403_v40 = vlaneseq }
  0x3a   :  { %v22_v53 = vld [vmem:[%s1342_s0] sm:$0xff]  ;;  %691 = vmatpush1.bf16.msra.mxu1 %v967_v50  ;;  %v940_v59 = vld [vmem:[%s1344_s2 + $0x114] ss:$8 sps:$4 sm:$0xff]   ;;  %v974_v61 = vld [vmem:[%s1345_s3 + $0x10c] ss:$12 sps:$4 sm:$0xff]   ;;  %v1029_v63 = vmov 0  }
  0x3b   :  { %280 = vmatpush1.bf16.msra.mxu0 %v931_v48  ;;  %v937_v54 = vld [vmem:[%s1344_s2 + $0x104] ss:$8 sps:$4 sm:$0xff]   ;;  %692 = vmatprep.subr.bf16.mxu1 %v968_v51  ;;  %v971_v56 = vld [vmem:[%s1345_s3 + $0xf4] ss:$12 sps:$4 sm:$0xff]   ;;  %v25_v57 = vpack.c.bf16 %v22_v53, %v22_v53  ;;  %v973_v60 = vld [vmem:[%s1345_s3 + $0xf0] ss:$12 sps:$4 sm:$0xff]  }
  0x3c   :  { %281 = vmatprep.subr.bf16.mxu0 %v932_v49  ;;  %v970_v55 = vld [vmem:[%s1345_s3 + $0xd8] ss:$12 sps:$4 sm:$0xff]   ;;  %v935_v58 = vld [vmem:[%s1344_s2 + $0x100] ss:$8 sps:$4 sm:$0xff]   ;;  %v24_v2 = vld [vmem:[%s1342_s0 + $0x10] sm:$0xff]  ;;  %vm247_vm0 = vcmask 261120  }
  0x3d   :  { %v938_v62 = vld [vmem:[%s1344_s2 + $0x110] ss:$8 sps:$4 sm:$0xff]   ;;  %v976_v0 = vld [vmem:[%s1345_s3 + $0x108] ss:$12 sps:$4 sm:$0xff]   ;;  %v979_v3 = vld [vmem:[%s1345_s3 + $0x120] ss:$12 sps:$4 sm:$0xff]   ;;  %v27_v5 = vpack.c.bf16 %v24_v2, %v24_v2 }
  0x3e   :  { %693 = vmatpush1.bf16.msra.mxu1 %v970_v55  ;;  %v977_v1 = vld [vmem:[%s1345_s3 + $0x124] ss:$12 sps:$4 sm:$0xff]   ;;  %v980_v4 = vld [vmem:[%s1345_s3 + $0x13c] ss:$12 sps:$4 sm:$0xff]   ;;  %v983_v7 = vld [vmem:[%s1345_s3 + $0x154] ss:$12 sps:$4 sm:$0xff]  }
  0x3f   :  { %282 = vmatpush1.bf16.msra.mxu0 %v934_v52  ;;  %694 = vmatprep.subr.bf16.mxu1 %v971_v56  ;;  %v982_v6 = vld [vmem:[%s1345_s3 + $0x138] ss:$12 sps:$4 sm:$0xff]   ;;  %v985_v8 = vld [vmem:[%s1345_s3 + $0x150] ss:$12 sps:$4 sm:$0xff]   ;;  %v988_v10 = vld [vmem:[%s1345_s3 + $0x168] ss:$12 sps:$4 sm:$0xff]  }
  0x40   :  { %292 = vmatprep.subr.bf16.mxu0 %v937_v54  ;;  %v986_v9 = vld [vmem:[%s1345_s3 + $0x16c] ss:$12 sps:$4 sm:$0xff]   ;;  %v989_v11 = vld [vmem:[%s1345_s3 + $0xc8] ss:$12 sps:$4 sm:$0xff]   ;;  %v64_v12 = vld [vmem:[%s1343_s1] sm:$0xff]  ;;  %v404_v41 = vshrl.u32 %v403_v40, 7 }
  0x41   :  { %v65_v13 = vunpack.c.l.bf16 %v64_v12  ;;  %v66_v14 = vunpack.c.h.bf16 %v64_v12  ;;  %v990_v24 = vld [vmem:[%s1345_s3 + $0x8] ss:$12 sps:$4 sm:$0xff]   ;;  %v991_v26 = vld [vmem:[%s1345_s3 + $0xe0] ss:$12 sps:$4 sm:$0xff]   ;;  %v993_v28 = vld [vmem:[%s1345_s3 + $0xf8] ss:$12 sps:$4 sm:$0xff]  }
  0x42   :  { %284 = vmatmul.mubr.bf16.vlgmr.msra.gmra.mrb[0].mxu0 %v25_v57  ;;  %695 = vmatpush1.bf16.msra.mxu1 %v973_v60  ;;  %v992_v27 = vld [vmem:[%s1345_s3 + $0x20] ss:$12 sps:$4 sm:$0xff]   ;;  %v994_v29 = vld [vmem:[%s1345_s3 + $0x38] ss:$12 sps:$4 sm:$0xff]   ;;  %v995_v30 = vld [vmem:[%s1345_s3 + $0x110] ss:$12 sps:$4 sm:$0xff]  }
  0x43   :  { %293 = vmatpush1.bf16.msra.mxu0 %v935_v58  ;;  %324 = vmatprep.mubr.bf16.mxu0 %v1029_v63  ;;  %v996_v31 = vld [vmem:[%s1345_s3 + $0x50] ss:$12 sps:$4 sm:$0xff]   ;;  %v997_v32 = vld [vmem:[%s1345_s3 + $0x128] ss:$12 sps:$4 sm:$0xff]   ;;  %v999_v34 = vld [vmem:[%s1345_s3 + $0x140] ss:$12 sps:$4 sm:$0xff]  }
  0x44   :  { %294 = vmatprep.subr.bf16.mxu0 %v940_v59  ;;  %696 = vmatprep.subr.bf16.mxu1 %v974_v61  ;;  %v998_v33 = vld [vmem:[%s1345_s3 + $0x68] ss:$12 sps:$4 sm:$0xff]   ;;  %v1000_v35 = vld [vmem:[%s1345_s3 + $0x80] ss:$12 sps:$4 sm:$0xff]   ;;  %v1001_v36 = vld [vmem:[%s1345_s3 + $0x158] ss:$12 sps:$4 sm:$0xff]  }
  0x45   :  { %v1002_v37 = vld [vmem:[%s1345_s3 + $0x98] ss:$12 sps:$4 sm:$0xff]   ;;  %v1003_v38 = vld [vmem:[%s1345_s3 + $0x170] ss:$12 sps:$4 sm:$0xff]   ;;  %v405_v42 = vsub.s32 0, %v404_v41  ;;  %v409_v44 = vsub.s32 1, %v404_v41 }
  0x46   :  { %697 = vmatpush1.bf16.msra.mxu1 %v976_v0  ;;  %v1004_v39 = vld [vmem:[%s1345_s3 + $0xb0] ss:$12 sps:$4 sm:$0xff]   ;;  %v401_v43 = vld [vmem:[%s1346_s4] sm:$0x7]  ;;  %v413_v53 = vsub.s32 2, %v404_v41  ;;  %s1030_s3 = smov [#allocation2]  }
  0x47   :  { %295 = vmatpush1.bf16.msra.mxu0 %v938_v62  ;;  %698 = vmatprep.subr.bf16.mxu1 %v977_v1  ;;  %v406_v45 = vrot.slane %v401_v43, %v405_v42  ;;  %v410_v46 = vrot.slane %v401_v43, %v409_v44  ;;  %s764_s1 = sshll.u32 %s1030_s3, 4  ;;  %s765_s1 = int_to_ptr.vmem [resolvable:$true] %s764_s1 }
  0x48   :  { %v414_v55 = vrot.slane %v401_v43, %v413_v53  ;;  %s1005_s4 = scalar_lea.vmem %s765_s1, 384  ;;  %p1010_p1 = scmp.lt.s32.totalorder %s765_s1, %s765_s1 }
  0x49   :  { %p1006_p0 = scmp.ne.s32.totalorder %s765_s1, %s1005_s4  ;;  %p1011_p2 = scmp.lt.s32.totalorder %s1005_s4, %s1005_s4 }
  0x4a   :  { %699 = vmatpush1.bf16.msra.mxu1 %v979_v3 }
  0x4b   :  { %700 = vmatprep.subr.bf16.mxu1 %v980_v4  ;;  %p1012_p3 = por %p1011_p2, %p1010_p1 }
  0x4d   :  { %p1013_p4 = pnand %p1012_p3, %p1006_p0 }
  0x4e   :  { %808 = vmatmul.mubr.msk.bf16.vlgmr.msra.gmra.mrb[0].mxu0 %vm247_vm0, %v27_v5  ;;  %701 = vmatpush1.bf16.msra.mxu1 %v982_v6 }
  0x4f   :  { %702 = vmatprep.subr.bf16.mxu1 %v983_v7 }
  0x52   :  { %703 = vmatpush1.bf16.msra.mxu1 %v985_v8 }
  0x53   :  { %704 = vmatprep.subr.bf16.mxu1 %v986_v9 }
  0x56   :  { %705 = vmatpush1.bf16.msra.mxu1 %v988_v10 }
  0x57   :  { %857 = vmatprep.subr.bf16.mxu1 %v989_v11 }
 0x121   :  { %v326_v15 = vpop.f32.mrb[0].mxu0 }
 0x122   :  { %v879_v16 = vadd.f32 %v326_v15, %v65_v13  ;;  %v328_v17 = vpop.f32.mrb[1].mxu0 }
 0x123   :  { %v880_v18 = vadd.f32 %v328_v17, %v66_v14  ;;  %v330_v19 = vpop.f32.mrb[2].mxu0 }
 0x124   :  { %v333_v20 = vmax.f32 %v879_v16, 0.0  ;;  %v331_v21 = vpop.f32.mrb[3].mxu0 }
 0x125   :  { %v334_v22 = vmax.f32 %v880_v18, 0.0 }
 0x126   :  { %v335_v25 = vpack.c.bf16 %v333_v20, %v333_v20 }
 0x127   :  { %v336_v23 = vpack.c.bf16 %v334_v22, %v334_v22 }
 0x129   :  { %706 = vmatprep.mubr.bf16.mxu1 %v336_v23 }
 0x12a   :  { %707 = vmatmul.mubr.bf16.vlgmr.msra.gmra.mrb[0].mxu1 %v335_v25 }
 0x12b   :  { %858 = vmatpush3.bf16.msra.mxu1 %v990_v24  ;;  %747 = vmatprep.mubr.bf16.mxu1 %v336_v23 }
 0x12c   :  { %859 = vmatprep.subr.bf16.mxu1 %v991_v26 }
 0x12f   :  { %860 = vmatpush3.bf16.msra.mxu1 %v992_v27 }
 0x130   :  { %861 = vmatprep.subr.bf16.mxu1 %v993_v28 }
 0x133   :  { %862 = vmatpush3.bf16.msra.mxu1 %v994_v29 }
 0x134   :  { %863 = vmatprep.subr.bf16.mxu1 %v995_v30 }
 0x137   :  { %864 = vmatpush3.bf16.msra.mxu1 %v996_v31 }
 0x138   :  { %865 = vmatprep.subr.bf16.mxu1 %v997_v32 }
 0x13b   :  { %866 = vmatpush3.bf16.msra.mxu1 %v998_v33 }
 0x13c   :  { %867 = vmatprep.subr.bf16.mxu1 %v999_v34 }
 0x13f   :  { %868 = vmatpush3.bf16.msra.mxu1 %v1000_v35 }
 0x140   :  { %869 = vmatprep.subr.bf16.mxu1 %v1001_v36 }
 0x143   :  { %870 = vmatpush3.bf16.msra.mxu1 %v1002_v37 }
 0x144   :  { %871 = vmatprep.subr.bf16.mxu1 %v1003_v38 }
 0x147   :  { %872 = vmatpush3.bf16.msra.mxu1 %v1004_v39 }
 0x14a   :  { %748 = vmatmul.mubr.bf16.vlgmr.msra.gmra.mrb[4].mxu1 %v335_v25 }
 0x1fd   :  { %v708_v47 = vpop.f32.mrb[0].mxu1 }
 0x1fe   :  { %v709_v48 = vadd.f32 %v708_v47, %v406_v45  ;;  %v710_v49 = vpop.f32.mrb[1].mxu1 }
 0x1ff   :  { %v711_v50 = vadd.f32 %v710_v49, %v410_v46  ;;  %v712_v51 = vpop.f32.mrb[2].mxu1 }
 0x200   :  { %755 = vst [vmem:[#allocation2] sm:$0xff] %v709_v48  ;;  %v713_v52 = vpop.f32.mrb[3].mxu1 }
 0x201   :  { %756 = vst [vmem:[#allocation2 + $0x8] sm:$0xff] %v711_v50 }
 0x21d   :  { %v873_v54 = vpop.f32.mrb[4].mxu1 }
 0x21e   :  { %v874_v56 = vpop.f32.mrb[5].mxu1 }
 0x21f   :  { %v875_v57 = vadd.f32 %v874_v56, %v873_v54  ;;  %v876_v58 = vpop.f32.mrb[6].mxu1 }
 0x220   :  { %v877_v59 = vpop.f32.mrb[7].mxu1 }
 0x221   :  { %v750_v60 = vadd.f32 %v875_v57, %v414_v55 }
 0x223   :  { %757 = vst.msk [vmem:[#allocation2 + $0x10] sm:$0xff] %vm247_vm0, %v750_v60 }
 0x224   :  { %1016 = shalt.err (!%p1013_p4)
}
 0x225   :  { %s1017_s18 = scalar_lea.hbm %s1347_s5, 384 }
 0x226   :  { %p1018_p5 = scmp.ne.s32.totalorder %s1347_s5, %s1017_s18  ;;  %p1021_p6 = scmp.lt.u32.totalorder %s1017_s18, %s1347_s5 }
 0x228   :  { %p1023_p7 = pnand %p1021_p6, %p1018_p5 }
 0x22a   :  { %1026 = shalt.err (!%p1023_p7)
}
 0x22b   :  { %767 = dma.vmem_to_hbm [thread:$0]  %s765_s1, 384, %s1347_s5, [#allocation3]  }
 0x22c   :  { %1027 = dma.done.wait [#allocation3], 384  }
 0x22d   :  { %1028 = vsyncadd [#allocation3], 4294966912 }
 0x22e   :  { %771 = vsyncpa [#allocation3], 1 }

</bundles_post_ra>
